<compile_context>
chip_gen: v6e
topology: v6e:2x2x1
jax: 0.10.0
libtpu: 0.0.40
codegen_flags: <defaults>
</compile_context>

<pallas_src>
import math

import jax
import jax.numpy as jnp
from jax.experimental import pallas as pl
from jax.experimental.pallas import tpu as pltpu

TARGET_LANES = 262144      # (4, 262144) f32 block = 4 MiB logical / 8 MiB VMEM
MIN_GRID_STEPS = 4         # keep >=4 grid steps so megacore can shard the axis
MIN_PALLAS_POINTS = 32768  # below this, plain JAX beats kernel launch overhead


# ---------------------------------------------------------------------------
# Glue: faithful port of RegNet.theta2pos_mat (pypose SE3 composition).
# ---------------------------------------------------------------------------
def _se3_translation(tx, ty, tz):
    """4x4 homogeneous matrix for pp.SE3([tx, ty, tz, 0, 0, 0, 1])."""
    m = jnp.eye(4, dtype=jnp.float32)
    m = m.at[0, 3].set(tx).at[1, 3].set(ty).at[2, 3].set(tz)
    return m


def _se3_rot_z(theta):
    """4x4 matrix for pp.so3([0, 0, theta]).Exp() embedded in SE3 (= Rz(theta))."""
    s = jnp.sin(theta / 2.0)
    c = jnp.cos(theta / 2.0)
    r00 = 1.0 - 2.0 * s * s
    r01 = -2.0 * s * c
    r10 = 2.0 * s * c
    r11 = 1.0 - 2.0 * s * s
    m = jnp.eye(4, dtype=jnp.float32)
    m = m.at[0, 0].set(r00).at[0, 1].set(r01)
    m = m.at[1, 0].set(r10).at[1, 1].set(r11)
    return m


def theta2pos_mat(theta, trans_pos):
    """pose_mat = P4 @ P3 @ P2 @ P1, exactly mirroring the PyTorch loop."""
    dist = trans_pos[1, 0] - trans_pos[0, 0]
    poses = [
        _se3_translation(dist, 0.0, 0.0),
        _se3_translation(-trans_pos[1, 0], -trans_pos[1, 1], 0.0),
        _se3_rot_z(theta),
        _se3_translation(trans_pos[1, 0], trans_pos[1, 1], 0.0),
    ]
    pose_mat = jnp.eye(4, dtype=jnp.float32)
    for pose in poses:
        pose_mat = pose @ pose_mat
    return pose_mat


# ---------------------------------------------------------------------------
# Pallas kernel: one (4, T) tile, out = pose(4,4) @ pc(4,T) as an outer-product
# sum of full (4, T) vector ops (VPU only; K=4 stays off the MXU).
# ---------------------------------------------------------------------------
def _apply_pose_kernel(pose_ref, pc_ref, out_ref):
    pose = pose_ref[...]                       # (4, 4) f32, tiny / VMEM-resident
    pc = pc_ref[...].astype(jnp.float32)       # (4, T)
    # out[r, t] = sum_k pose[r, k] * pc[k, t]
    #   pose[:, k:k+1] -> (4,1)  lane-broadcast (replicated layout, ~free)
    #   pc[k:k+1, :]   -> (1,T)  sublane-broadcast
    # 4 full-(4,T) muls + 3 adds per tile, one coalesced full-block store.
    acc = pose[:, 0:1] * pc[0:1, :]
    for k in range(1, 4):
        acc = acc + pose[:, k:k + 1] * pc[k:k + 1, :]
    out_ref[...] = acc.astype(out_ref.dtype)


def _choose_tile(n):
    """Lane tile: big (amortize per-step overhead) but keep >= MIN_GRID_STEPS."""
    n_aligned = ((n + 127) // 128) * 128
    per_step = -(-n_aligned // MIN_GRID_STEPS)
    per_step = ((per_step + 127) // 128) * 128
    return max(128, min(TARGET_LANES, per_step))


def _apply_pose_pallas(pose_mat, pc1):
    n = pc1.shape[1]
    tile = _choose_tile(n)
    grid = (pl.cdiv(n, tile),)
    return pl.pallas_call(
        _apply_pose_kernel,
        out_shape=jax.ShapeDtypeStruct(pc1.shape, pc1.dtype),
        grid_spec=pltpu.PrefetchScalarGridSpec(
            num_scalar_prefetch=0,
            grid=grid,
            in_specs=[
                # 4x4 pose matrix: full-array block, constant across the grid.
                pl.BlockSpec((4, 4), lambda i: (0, 0)),
                # point-cloud tile, streamed lane-dense; ragged last block is
                # handled by Pallas (out-of-range lanes never written back).
                pl.BlockSpec((4, tile), lambda i: (0, i)),
            ],
            out_specs=pl.BlockSpec((4, tile), lambda i: (0, i)),
        ),
        compiler_params=pltpu.CompilerParams(
            dimension_semantics=("parallel",),
            vmem_limit_bytes=48 * 1024 * 1024,
        ),
    )(pose_mat.astype(jnp.float32), pc1)


def regnet_forward(theta, pc1, trans_pos, *, min_pallas_points=MIN_PALLAS_POINTS):
    """Equivalent of RegNet.forward(pc1, trans_pos)."""
    pose_mat = theta2pos_mat(theta, trans_pos)          # (4, 4) glue
    n = pc1.shape[1]
    if n < min_pallas_points:
        # Small-N fast path: fixed pallas_call overhead would dominate.
        return (pose_mat @ pc1.astype(jnp.float32)).astype(pc1.dtype)
    return _apply_pose_pallas(pose_mat, pc1)


if __name__ == "__main__":
    key = jax.random.PRNGKey(0)
    k1, k2, k3 = jax.random.split(key, 3)

    # Deterministic "parameter": RegNet(angle=30) -> theta = 30/180*pi radians.
    angle = 30.0
    theta = jnp.asarray(angle / 180.0 * math.pi, dtype=jnp.float32)

    # pc1: homogeneous point cloud (4, N); trans_pos: (2, 2) positions.
    n_points = 256
    xyz = jax.random.normal(k1, (3, n_points), dtype=jnp.float32)
    pc1 = jnp.concatenate([xyz, jnp.ones((1, n_points), jnp.float32)], axis=0)
    trans_pos = jax.random.normal(k2, (2, 2), dtype=jnp.float32)

    ref = theta2pos_mat(theta, trans_pos) @ pc1

    # 1) Force the Pallas path at the small demo shape (grid of 2 tiles).
    out = regnet_forward(theta, pc1, trans_pos, min_pallas_points=0)
    out = jax.block_until_ready(out)
    assert out.shape == pc1.shape and out.dtype == pc1.dtype
    assert jnp.allclose(out, ref, atol=1e-5, rtol=1e-5)

    # 2) Ragged last block (N not a multiple of the lane tile / of 128).
    n2 = 333
    xyz2 = jax.random.normal(k3, (3, n2), dtype=jnp.float32)
    pc1b = jnp.concatenate([xyz2, jnp.ones((1, n2), jnp.float32)], axis=0)
    out2 = jax.block_until_ready(
        regnet_forward(theta, pc1b, trans_pos, min_pallas_points=0))
    ref2 = theta2pos_mat(theta, trans_pos) @ pc1b
    assert out2.shape == pc1b.shape
    assert jnp.allclose(out2, ref2, atol=1e-5, rtol=1e-5)

    # 3) Default small-N fast path (plain JAX, no pallas_call).
    out3 = jax.block_until_ready(regnet_forward(theta, pc1, trans_pos))
    assert jnp.allclose(out3, ref, atol=1e-5, rtol=1e-5)

    # NOTE: RegNet.criterion (geomloss SamplesLoss 'sinkhorn') is not part of
    # forward and is not implemented here.
    # TODO(synk): criterion() / Sinkhorn OT loss has no Pallas port here.
    print("KERNEL_OK")
</pallas_src>

<mosaic_0001>
module attributes {stable_mosaic.version = 11 : i64} {
  func.func @_apply_pose_kernel(%arg0: i32, %arg1: memref<4x4xf32, #tpu.memory_space<vmem>>, %arg2: memref<4x128xf32, #tpu.memory_space<vmem>>, %arg3: memref<4x128xf32, #tpu.memory_space<vmem>>) attributes {dimension_semantics = [#tpu.dimension_semantics<parallel>], iteration_bounds = array<i64: 2>, scalar_prefetch = 0 : i64, scratch_operands = 0 : i64, tpu.core_type = #tpu.core_type<tc>, window_params = [{pipeline_mode = #tpu.pipeline_mode<synchronous>, transform_indices = @transform_0, window_bounds = array<i64: 4, 4>}, {transform_indices = @transform_1, window_bounds = array<i64: 4, 128>}, {transform_indices = @transform_2, window_bounds = array<i64: 4, 128>}]} {
    %c0 = arith.constant 0 : index
    %c0_0 = arith.constant 0 : index
    %0 = vector.load %arg1[%c0, %c0_0] : memref<4x4xf32, #tpu.memory_space<vmem>>, vector<4x4xf32>
    %c0_1 = arith.constant 0 : index
    %c0_2 = arith.constant 0 : index
    %1 = vector.load %arg2[%c0_1, %c0_2] : memref<4x128xf32, #tpu.memory_space<vmem>>, vector<4x128xf32>
    %2 = vector.extract_strided_slice %0 {offsets = [0, 0], sizes = [4, 1], strides = [1, 1]} : vector<4x4xf32> to vector<4x1xf32>
    %3 = vector.extract_strided_slice %1 {offsets = [0, 0], sizes = [1, 128], strides = [1, 1]} : vector<4x128xf32> to vector<1x128xf32>
    %4 = vector.broadcast %2 : vector<4x1xf32> to vector<4x128xf32>
    %5 = vector.broadcast %3 : vector<1x128xf32> to vector<4x128xf32>
    %6 = arith.mulf %4, %5 : vector<4x128xf32>
    %7 = vector.extract_strided_slice %0 {offsets = [0, 1], sizes = [4, 1], strides = [1, 1]} : vector<4x4xf32> to vector<4x1xf32>
    %8 = vector.extract_strided_slice %1 {offsets = [1, 0], sizes = [1, 128], strides = [1, 1]} : vector<4x128xf32> to vector<1x128xf32>
    %9 = vector.broadcast %7 : vector<4x1xf32> to vector<4x128xf32>
    %10 = vector.broadcast %8 : vector<1x128xf32> to vector<4x128xf32>
    %11 = arith.mulf %9, %10 : vector<4x128xf32>
    %12 = arith.addf %6, %11 : vector<4x128xf32>
    %13 = vector.extract_strided_slice %0 {offsets = [0, 2], sizes = [4, 1], strides = [1, 1]} : vector<4x4xf32> to vector<4x1xf32>
    %14 = vector.extract_strided_slice %1 {offsets = [2, 0], sizes = [1, 128], strides = [1, 1]} : vector<4x128xf32> to vector<1x128xf32>
    %15 = vector.broadcast %13 : vector<4x1xf32> to vector<4x128xf32>
    %16 = vector.broadcast %14 : vector<1x128xf32> to vector<4x128xf32>
    %17 = arith.mulf %15, %16 : vector<4x128xf32>
    %18 = arith.addf %12, %17 : vector<4x128xf32>
    %19 = vector.extract_strided_slice %0 {offsets = [0, 3], sizes = [4, 1], strides = [1, 1]} : vector<4x4xf32> to vector<4x1xf32>
    %20 = vector.extract_strided_slice %1 {offsets = [3, 0], sizes = [1, 128], strides = [1, 1]} : vector<4x128xf32> to vector<1x128xf32>
    %21 = vector.broadcast %19 : vector<4x1xf32> to vector<4x128xf32>
    %22 = vector.broadcast %20 : vector<1x128xf32> to vector<4x128xf32>
    %23 = arith.mulf %21, %22 : vector<4x128xf32>
    %24 = arith.addf %18, %23 : vector<4x128xf32>
    %c0_3 = arith.constant 0 : index
    %c0_4 = arith.constant 0 : index
    %25 = vector.load %arg3[%c0_3, %c0_4] : memref<4x128xf32, #tpu.memory_space<vmem>>, vector<4x128xf32>
    tpu.vector_store %arg3[%c0_3, %c0_4], %24 {strides = array<i32>} : memref<4x128xf32, #tpu.memory_space<vmem>>, vector<4x128xf32>,
    return
  }
  func.func @transform_0(%arg0: i32) -> (i32, i32) {
    %c0_i32 = arith.constant 0 : i32
    %c0_i32_0 = arith.constant 0 : i32
    %c0_i32_1 = arith.constant 0 : i32
    return %c0_i32, %c0_i32_0 : i32, i32
  }
  func.func @transform_1(%arg0: i32) -> (i32, i32) {
    %c0_i32 = arith.constant 0 : i32
    %c0_i32_0 = arith.constant 0 : i32
    return %c0_i32, %arg0 : i32, i32
  }
  func.func @transform_2(%arg0: i32) -> (i32, i32) {
    %c0_i32 = arith.constant 0 : i32
    %c0_i32_0 = arith.constant 0 : i32
    return %c0_i32, %arg0 : i32, i32
  }
}

</mosaic_0001>

<bundles_post_ra>
// kernel: tpu_custom_call.1
= control target key start
LH: loop header
LB: loop body
LE: loop exit
PB: predicated region body
PF: predicated region fallthrough
CT: control target
= control target key end

     0   :  { %7 = vsyncpa [#allocation3], 0  ;;  %s707_s0 = inlined_call_operand.hbm [shape: f32[4,4], index: 0, kind: input, shape index: {}]   ;;  %s708_s1 = inlined_call_operand.hbm [shape: f32[4,256], index: 1, kind: input, shape index: {}]   ;;  %s709_s2 = inlined_call_operand.hbm [shape: f32[4,256], index: 2, kind: output, shape index: {}]  }
   0x1   :  { %8 = vsyncpa [#allocation6], 0 }
   0x2   :  { %10 = vsyncpa [#allocation6 + $0x1], 0 }
   0x3   :  { %11 = vsyncpa [#allocation4], 0 }
   0x4   :  { %13 = vsyncpa [#allocation4 + $0x1], 0  ;;  %s537_s9 = smov 0   ;;  %s539_s10 = smov 0  }
   0x5   :  { %s541_s11 = smov 0   ;;  %s543_s12 = smov 0  }
   0x6 LB: > { %s558_s13 = sadd.s32 4294967295, %s513_s12   ;;  %s311_s14 = sadd.s32 4294967294, %s513_s12   ;;  %s513_s12 = sphi %s543_s12, %s732_s12   ;;  %s509_s11 = sphi %s541_s11, %s731_s11   ;;  %s505_s10 = sphi %s539_s10, %s730_s10   ;;  %s501_s9 = sphi %s537_s9, %s729_s9  }
   0x7   : > { %p60_p0 = scmp.ne.s32.totalorder %s505_s10, %s501_s9  ;;  %p710_p1 = scmp.eq.s32.totalorder %s558_s13, 0 }
   0x8   : > { %p90_p3 = scmp.eq.s32.totalorder %s311_s14, 1  ;;  %p312_p5 = scmp.ge.s32.totalorder %s513_s12, 1 }
   0x9   : > { %p567_p4 = por %p710_p1, %p60_p0  ;;  %p97_p7 = scmp.lt.s32.totalorder %s513_s12, 3 }
   0xa   : > { %p572_p6 = por %p90_p3, %p60_p0  ;;  %s515_s18 = smov [#allocation2]  }
   0xb   : > { %s714_s15 = scalar_select %p567_p4, 1, 0 }
   0xc   : > { %s715_s16 = scalar_select %p572_p6, 1, 0 }
   0xd   : > { %p577_p8 = pnand %p312_p5, %p97_p7  ;;  %s110_s19 = sshll.u32 %s515_s18, 4  ;;  %s111_s19 = int_to_ptr.vmem [resolvable:$true] %s110_s19 }
   0xe   : > { %s585_s20 = sadd.s32 1, %s513_s12   ;;  %s47_s24 = sadd.s32 1, %s509_s11 }
   0xf   : > { %s716_s17 = scalar_select %p577_p8, 1, 0 }
  0x10   : > { %p333_p10 = pneg %p577_p8  ;;  %s44_s22 = ssub.s32 %s513_s12, %s585_s20 }
  0x11   : > { %p595_p12 = scmp.eq.s32.totalorder %s44_s22, 0  ;;  %p54_p13 = scmp.ne.s32.totalorder %s509_s11, %s505_s10 }
  0x12   : > { %p589_p11 = pnand %p333_p10, %p710_p1  ;;  %s402_s25 = scalar_lea.vmem %s111_s19, 64 }
  0x13   : > { %p403_p3 = scmp.ne.s32.totalorder %s111_s19, %s402_s25  ;;  %p410_p9 = scmp.lt.s32.totalorder %s111_s19, %s111_s19 }
  0x14   : > { %p393_p0 = pneg %p589_p11  ;;  %p411_p2 = scmp.lt.s32.totalorder %s402_s25, %s402_s25 }
  0x16   : > { %p405_p5 = pnand %p403_p3, %p393_p0  ;;  %p412_p10 = por %p411_p2, %p410_p9 }
  0x18   : > { %p406_p7 = pneg %p405_p5 }
  0x1a   : > { %p413_p1 = pnand %p412_p10, %p406_p7 }
  0x1c   : > { %416 = shalt.err (!%p413_p1)
}
  0x1d   : > { %336 = dma.hbm_to_vmem [thread:$0]  (!%p589_p11), %s707_s0, 64, %s111_s19, [#allocation3]  }
  0x1e   : > { %s612_s28 = scalar_select %p595_p12, %s509_s11, %s47_s24  }
  0x1f   : > { %p55_p1 = scmp.eq.s32.totalorder %s513_s12, 0  ;;  %p719_p2 = scmp.eq.s32.totalorder %s558_s13, 1 }
  0x20   : > { %p346_p0 = scmp.lt.s32.totalorder %s513_s12, 2  ;;  %s121_s30 = sand.u32 1, %s509_s11  }
  0x21   : > { %p620_p9 = por %p719_p2, %p54_p13  ;;  %p56_p3 = por %p55_p1, %p54_p13 }
  0x22   : > { %s315_s3 = sshll.u32 %s121_s30, 2  ;;  %s316_s4 = sshll.u32 %s513_s12, 6 }
  0x23   : > { %s720_s29 = scalar_select %p620_p9, 1, 0 }
  0x24   : > { %s633_s7 = scalar_lea.hbm %s708_s1, %s316_s4  ;;  %s125_s8 = scalar_lea.vmem [#allocation5], %s315_s3 }
  0x25   : > { %s132_s14 = sshll.u32 %s125_s8, 4  ;;  %p635_p11 = pnand %p346_p0, %p56_p3  ;;  %s133_s14 = int_to_ptr.vmem [resolvable:$true] %s132_s14 }
  0x26   : > { %s122_s19 = scalar_lea.sflag [#allocation6], %s121_s30  ;;  %s417_s21 = scalar_lea.hbm %s633_s7, 64 }
  0x27   : > { %p418_p12 = scmp.ne.s32.totalorder %s633_s7, %s417_s21  ;;  %p419_p13 = pneg %p635_p11 }
  0x28   : > { %s422_s24 = scalar_lea.hbm %s708_s1, 128  ;;  %p423_p10 = scmp.lt.s32.totalorder %s633_s7, %s708_s1 }
  0x29   : > { %p420_p5 = pnand %p419_p13, %p418_p12  ;;  %p424_p1 = scmp.lt.s32.totalorder %s422_s24, %s417_s21 }
  0x2b   : > { %p421_p7 = pneg %p420_p5  ;;  %p425_p2 = por %p424_p1, %p423_p10 }
  0x2d   : > { %p426_p0 = pnand %p425_p2, %p421_p7 }
  0x2f   : > { %429 = shalt.err (!%p426_p0)
}
  0x30   : > { %s430_s27 = scalar_lea.vmem %s133_s14, 64  ;;  %s516_s30 = smov [#allocation5]  }
  0x31   : > { %p431_p3 = scmp.ne.s32.totalorder %s133_s14, %s430_s27  ;;  %s435_s3 = sshll.u32 %s516_s30, 4  ;;  %s436_s3 = int_to_ptr.vmem [resolvable:$false] %s435_s3 }
  0x32   : > { %s437_s4 = scalar_lea.vmem %s436_s3, 128  ;;  %p438_p12 = scmp.lt.s32.totalorder %s133_s14, %s436_s3 }
  0x33   : > { %p433_p6 = pnand %p431_p3, %p419_p13  ;;  %p439_p5 = scmp.lt.s32.totalorder %s437_s4, %s430_s27 }
  0x35   : > { %p434_p9 = pneg %p433_p6  ;;  %p440_p4 = por %p439_p5, %p438_p12 }
  0x37   : > { %p441_p8 = pnand %p440_p4, %p434_p9 }
  0x39   : > { %444 = shalt.err (!%p441_p8)
}
  0x3a   : > { %340 = dma.hbm_to_vmem [thread:$0]  (!%p635_p11), %s633_s7, 64, %s133_s14, %s122_s19  }
  0x3b   : > { %p722_p7 = scmp.ne.s32.totalorder %s716_s17, 0 }
  0x3c   : > { %p723_p10 = scmp.eq.s32.totalorder (!%p722_p7), %s558_s13, 0 }
  0x3d   : > { %141 = sbr.rel (%p722_p7) target bundleno = 223 (0xdf), region = 28 }
  0x42   : > { %488 = dma.done.wait (%p723_p10), [#allocation3], 64   ;;  %p724_p6 = pmov %p723_p10 }
  0x43   : > { %s660_s5 = sand.u32 1, %s505_s10   ;;  %p725_p4 = scmp.ne.s32.totalorder %s714_s15, 0 }
  0x44   : > { %490 = vsyncadd (%p724_p6), [#allocation3], 4294967232  ;;  %s319_s6 = sshll.u32 %s660_s5, 2  ;;  %s148_s8 = scalar_lea.sflag [#allocation6], %s660_s5 }
  0x45   : > { %s151_s7 = scalar_lea.vmem [#allocation5], %s319_s6 }
  0x46   : > { %492 = dma.done.wait (%p725_p4), %s148_s8, 64  }
  0x47   : > { %494 = vsyncadd (%p725_p4), %s148_s8, 4294967232  ;;  %v517_v0 = vmov 0   ;;  %v518_v1 = vmov 2   ;;  %v172_v2 = vld [vmem:[#allocation2] sm:$0xf]  ;;  %v519_v3 = vmov 1   ;;  %v179_v5 = vlaneseq }
  0x48   : > { %386 = vset.pattern.permute.xlu0 %v517_v0  ;;  %388 = vset.pattern.permute.xlu1 %v518_v1  ;;  %v520_v4 = vmov 3   ;;  %v173_v9 = vld [vmem:[%s151_s7] sm:$0xf]  ;;  %s322_s15 = sshll.u32 %s558_s13, 6  ;;  %s171_s17 = scalar_lea.vmem [#allocation7], %s319_s6 }
  0x49   : > { %176 = vperm.xlu0 %386, %v172_v2   ;;  %195 = vperm.xlu1 %388, %v172_v2   ;;  %v180_v6 = vshrl.u32 %v179_v5, 7  ;;  %s229_s14 = sshll.u32 %s171_s17, 4  ;;  %s227_s21 = scalar_lea.hbm %s709_s2, %s322_s15  ;;  %s230_s14 = int_to_ptr.vmem [resolvable:$true] %s229_s14 }
  0x4a   : > { %s216_s22 = scalar_lea.sflag [#allocation4], %s660_s5  ;;  %s445_s23 = scalar_lea.vmem %s230_s14, 64 }
  0x4b   : > { %v181_v7 = vsub.s32 0, %v180_v6  ;;  %v190_v8 = vsub.s32 1, %v180_v6  ;;  %v200_v11 = vsub.s32 2, %v180_v6  ;;  %v210_v13 = vsub.s32 3, %v180_v6  ;;  %p446_p8 = scmp.ne.s32.totalorder %s230_s14, %s445_s23  ;;  %p726_p9 = scmp.ne.s32.totalorder %s720_s29, 0 }
  0x4c   : > { %s521_s24 = smov [#allocation7]  }
  0x4d   : > { %387 = vset.pattern.permute.xlu0 %v519_v3  ;;  %389 = vset.pattern.permute.xlu1 %v520_v4  ;;  %v182_v14 = vrot.slane %v173_v9, %v181_v7  ;;  %v191_v15 = vrot.slane %v173_v9, %v190_v8  ;;  %v201_v16 = vrot.slane %v173_v9, %v200_v11  ;;  %p447_p11 = pnand %p446_p8, %p726_p9  ;;  %s449_s25 = sshll.u32 %s521_s24, 4  ;;  %s450_s25 = int_to_ptr.vmem [resolvable:$false] %s449_s25 }
  0x4e   : > { %185 = vperm.xlu0 %387, %v172_v2   ;;  %205 = vperm.xlu1 %389, %v172_v2   ;;  %v211_v17 = vrot.slane %v173_v9, %v210_v13  ;;  %s451_s13 = scalar_lea.vmem %s450_s25, 128  ;;  %p452_p1 = scmp.lt.s32.totalorder %s230_s14, %s450_s25 }
  0x4f   : > { %p448_p13 = pneg %p447_p11  ;;  %p453_p2 = scmp.lt.s32.totalorder %s451_s13, %s445_s23 }
  0x51   : > { %p454_p0 = por %p453_p2, %p452_p1 }
  0x52   : > { %390 = vset.pattern.permute.xlu0 %v520_v4 }
  0x53   : > { %p455_p3 = pnand %p454_p0, %p448_p13 }
  0xc4   : > { %v177_v10 = vpop.permute.xlu0 %176  ;;  %v196_v12 = vpop.permute.xlu1 %195 }
  0xc5   : > { %v183_v20 = vmul.f32 %v182_v14, %v177_v10  ;;  %v202_v22 = vmul.f32 %v201_v16, %v196_v12 }
  0xc9   : > { %v186_v18 = vpop.permute.xlu0 %185  ;;  %v206_v19 = vpop.permute.xlu1 %205 }
  0xca   : > { %v192_v21 = vmul.f32 %v191_v15, %v186_v18  ;;  %v212_v24 = vmul.f32 %v211_v17, %v206_v19 }
  0xcc   : > { %v193_v23 = vadd.f32 %v192_v21, %v183_v20 }
  0xce   : > { %v203_v25 = vadd.f32 %v202_v22, %v193_v23 }
  0xd0   : > { %v213_v26 = vadd.f32 %v212_v24, %v203_v25 }
  0xd2   : > { %214 = vst [vmem:[%s171_s17] sm:$0xf] %v213_v26 }
  0xd3   : > { %458 = shalt.err (!%p455_p3)
}
  0xd4   : > { %s459_s26 = scalar_lea.hbm %s227_s21, 64  ;;  %s463_s3 = scalar_lea.hbm %s709_s2, 128 }
  0xd5   : > { %p460_p12 = scmp.ne.s32.totalorder %s227_s21, %s459_s26  ;;  %p464_p10 = scmp.lt.s32.totalorder %s227_s21, %s709_s2 }
  0xd6   : > { %p465_p6 = scmp.lt.s32.totalorder %s463_s3, %s459_s26 }
  0xd7   : > { %p461_p5 = pnand %p460_p12, %p726_p9 }
  0xd8   : > { %p466_p4 = por %p465_p6, %p464_p10 }
  0xd9   : > { %p462_p7 = pneg %p461_p5 }
  0xdb   : > { %p467_p8 = pnand %p466_p4, %p462_p7 }
  0xdd   : > { %470 = shalt.err (!%p467_p8)
}
  0xde   : > { %331 = dma.vmem_to_hbm [thread:$0]  (%p726_p9), %s230_s14, 64, %s227_s21, %s216_s22  }
  0xdf PF: > { %s241_s6 = sand.u32 1, %s501_s9   ;;  %p727_p11 = scmp.ne.s32.totalorder %s715_s16, 0 }
  0xe0   : > { %p728_p13 = scmp.ge.s32.totalorder %s513_s12, 2  ;;  %s242_s8 = scalar_lea.sflag [#allocation4], %s241_s6 }
  0xe2   : > { %p342_p1 = pnand %p728_p13, %p727_p11 }
  0xe4   : > { %p343_p2 = pneg %p342_p1 }
  0xe6   : > { %496 = dma.done.wait (%p343_p2), %s242_s8, 64  }
  0xe7   : > { %498 = vsyncadd (%p343_p2), %s242_s8, 4294967232  ;;  %p16_p0 = scmp.ge.s32.totalorder %s585_s20, 4   ;;  %s729_s9 = smov %s505_s10 }
  0xe8   : > { %s730_s10 = smov %s509_s11  ;;  %s731_s11 = smov %s612_s28 }
  0xe9   : > { %s732_s12 = smov %s585_s20  ;;  %18 = sbr.rel (!%p16_p0) target bundleno = 6 (0x6), region = 78 }
  0xee   :  { %247 = vsyncpa [#allocation3], 1 }
  0xef   :  { %249 = vsyncpa [#allocation3 + $0x1], 1 }
  0xf0   :  { %250 = vsyncpa [#allocation6], 1 }
  0xf1   :  { %252 = vsyncpa [#allocation6 + $0x1], 1 }
  0xf2   :  { %253 = vsyncpa [#allocation4], 1 }
  0xf3   :  { %255 = vsyncpa [#allocation4 + $0x1], 1 }

</bundles_post_ra>
